<compile_context>
chip_gen: v6e
topology: v6e:2x2x1
jax: 0.10.0
libtpu: 0.0.40
codegen_flags: <defaults>
</compile_context>

<pallas_src>
import math

import jax
import jax.numpy as jnp
from jax import lax
from jax.experimental import pallas as pl
from jax.experimental.pallas import tpu as pltpu


_STATIC_UNROLL_MAX = 32  # full static unroll of the L_i chain up to this window length


# ---------------------------------------------------------------------------
# Packing helpers (wrapper-side layout plumbing, done once per call)
# ---------------------------------------------------------------------------
def _pack(x):
    """(B, L, V) -> (L, B*V): lane axis becomes B*V (dense), sublanes = window."""
    B, L, V = x.shape
    return jnp.transpose(x, (1, 0, 2)).reshape(L, B * V)


def _unpack(xp, B, L, V):
    """(L, B*V) -> (B, L, V)."""
    return jnp.transpose(xp.reshape(L, B, V), (1, 0, 2))


def _tile_params(weight_iov, bias_lv, gating_v, tb):
    """Cast params to f32 once, apply tanh to gating, and tile to the lane-block width.

    weight (L, L, V) -> (L, L, tb*V);  bias (L, V) -> (L, tb*V);  gating (V,) -> (1, tb*V)
    Lane ordering inside a block is (sample, variable) i.e. lane = j*V + v, so a plain
    tile over the last axis reproduces the per-variable parameters for every sample.
    """
    V = weight_iov.shape[-1]
    w_t = jnp.tile(weight_iov.astype(jnp.float32), (1, 1, tb))
    b_t = jnp.tile(bias_lv.astype(jnp.float32), (1, tb))
    g_t = jnp.tile(jnp.tanh(gating_v.astype(jnp.float32)).reshape(1, V), (1, tb))
    return w_t, b_t, g_t


# ---------------------------------------------------------------------------
# Tiling heuristics
# ---------------------------------------------------------------------------
def _pick_batch_block(B, L, V, itemsize, batch_block,
                      x_block_target=2 << 20, weight_tile_cap=8 << 20):
    """Samples per lane block. tb*V must be a multiple of 128 (lane-dense + legal
    BlockSpec) unless the block spans the whole batch."""
    unit = 128 // math.gcd(V, 128)  # tb granularity giving 128-aligned lane blocks

    def legalize(tb):
        tb = max(1, min(int(tb), B))
        if tb == B:
            return B
        tb = (tb // unit) * unit
        return B if tb < unit else tb

    if batch_block is not None:
        return legalize(batch_block)
    if B < 2 * unit:
        return B  # too small to tile with 128-aligned lane blocks: one fat block
    per_sample_x = L * V * itemsize
    per_sample_w = L * L * V * 4  # tiled f32 weight; x2 for the default double buffer
    cap = min(x_block_target // max(per_sample_x, 1),
              weight_tile_cap // max(2 * per_sample_w, 1))
    tb = max(unit, (min(cap, B) // unit) * unit)
    tb = min(tb, B)
    # keep at least 2 pipelined grid steps (DMA/compute overlap + v7x megacore)
    while tb > unit and -(-B // tb) < 2:
        tb -= unit
    return tb


def _pick_rows(B, row_elems, itemsize, batch_block, target_bytes=2 << 20):
    """Row (sample) block for the 2-D metric kernel; rows must be a multiple of 8
    (sublane rule) unless the block spans the whole batch."""
    if batch_block is not None:
        tb = max(1, min(int(batch_block), B))
        return tb if tb == B else max(8, (tb // 8) * 8)
    if B < 16:
        return B
    tb = max(8, (min(target_bytes // max(row_elems * itemsize, 1), B) // 8) * 8)
    while tb > 8 and -(-B // tb) < 2:
        tb -= 8
    return tb


def _gcm_vmem_limit(L, TN, act_itemsize, fused):
    act_blk = L * TN * act_itemsize
    n_streams = 3 if fused else 2            # x, out (+ gt), each double-buffered
    need = 2 * n_streams * act_blk
    need += 2 * L * L * TN * 4               # resident weight tile (default double buffer)
    need += 2 * (L + 1) * TN * 4             # bias + gating
    if fused:
        need += 2 * 2 * TN * 4               # sq / ab output rows
    need += 4 << 20                          # headroom for compiler-internal scratch
    return int(min(max(need, 32 << 20), 128 << 20))


def _err_vmem_limit(tb, row_elems, itemsize):
    need = 2 * 2 * tb * row_elems * itemsize + 2 * 2 * tb * 4 + (4 << 20)
    return int(min(max(need, 32 << 20), 128 << 20))


# ---------------------------------------------------------------------------
# In-kernel compute helpers
# ---------------------------------------------------------------------------
def _gcm_contract(x_ref, w_ref):
    """acc[o, lane] = sum_i x[i, lane] * w[i, o, lane]  on the VPU.

    x_ref: (L, TN) block of the packed activations, w_ref: (L, L, TN) tiled weight.
    Rows are pulled straight from the ref (x_ref[i] -> (TN,)) so the sublane broadcast
    in the FMA rides a replicated layout instead of repeatedly re-slicing a live tile.
    """
    L, Lo, TN = w_ref.shape

    def step(i, acc):
        xi = x_ref[i].astype(jnp.float32)          # (TN,) row i, broadcasts over L_o
        return acc + xi * w_ref[i]                  # w_ref[i] -> (L_o, TN), already f32

    acc = jnp.zeros((Lo, TN), jnp.float32)
    if L <= _STATIC_UNROLL_MAX:
        for i in range(L):                          # small window: full static unroll
            acc = step(i, acc)
        return acc
    # Large windows: bounded live ranges + LLO-visible ILP via partial unroll.
    # (At L >= ~64 an MXU formulation would be preferable; see module docstring.)
    return lax.fori_loop(0, L, step, acc, unroll=8)


# ---------------------------------------------------------------------------
# Kernels
# ---------------------------------------------------------------------------
def _gcm_kernel(x_ref, w_ref, b_ref, g_ref, o_ref):
    acc = _gcm_contract(x_ref, w_ref)
    x = x_ref[...].astype(jnp.float32)                     # (L, TN)
    out = x + g_ref[...] * (acc + b_ref[...])              # g: (1, TN), b: (L, TN), f32
    o_ref[...] = out.astype(o_ref.dtype)


def _gcm_err_kernel(x_ref, w_ref, b_ref, g_ref, gt_ref, o_ref, sq_ref, ab_ref):
    acc = _gcm_contract(x_ref, w_ref)
    x = x_ref[...].astype(jnp.float32)
    out = x + g_ref[...] * (acc + b_ref[...])
    o_ref[...] = out.astype(o_ref.dtype)
    # Epilogue: per-(sample, variable) error partial sums; the calibrated prediction
    # never leaves VMEM and the stores are one lane-dense row per block.
    d = out - gt_ref[...].astype(jnp.float32)
    sq_ref[...] = jnp.sum(d * d, axis=0, keepdims=True)    # (1, TN)
    ab_ref[...] = jnp.sum(jnp.abs(d), axis=0, keepdims=True)


def _err_kernel(pred_ref, gt_ref, mse_ref, mae_ref):
    d = pred_ref[...].astype(jnp.float32) - gt_ref[...].astype(jnp.float32)
    inv = 1.0 / float(d.shape[1])
    mse_ref[...] = jnp.sum(d * d, axis=1, keepdims=True) * inv      # (tb, 1)
    mae_ref[...] = jnp.sum(jnp.abs(d), axis=1, keepdims=True) * inv


# ---------------------------------------------------------------------------
# Wrappers
# ---------------------------------------------------------------------------
def gcm_forward(x, weight_iov, bias_lv, gating_v, batch_block=None):
    """GCM.forward with var_wise=True.

    x:          (B, L, V)
    weight_iov: (L, L, V)  -- PyTorch parameter layout
    bias_lv:    (L, V)
    gating_v:   (V,)       -- raw gating; tanh applied once in the wrapper
    """
    B, L, V = x.shape
    tb = _pick_batch_block(B, L, V, x.dtype.itemsize, batch_block)
    nb = pl.cdiv(B, tb)
    TN = tb * V
    xp = _pack(x)
    w_t, b_t, g_t = _tile_params(weight_iov, bias_lv, gating_v, tb)
    out_p = pl.pallas_call(
        _gcm_kernel,
        out_shape=jax.ShapeDtypeStruct((L, B * V), x.dtype),
        grid=(nb,),
        in_specs=[
            pl.BlockSpec((L, TN), lambda b: (0, b)),        # x   (streamed over batch)
            pl.BlockSpec((L, L, TN), lambda b: (0, 0, 0)),  # weight (resident)
            pl.BlockSpec((L, TN), lambda b: (0, 0)),        # bias   (resident)
            pl.BlockSpec((1, TN), lambda b: (0, 0)),        # tanh(gating) (resident)
        ],
        out_specs=pl.BlockSpec((L, TN), lambda b: (0, b)),
        compiler_params=pltpu.CompilerParams(
            dimension_semantics=("parallel",),
            vmem_limit_bytes=_gcm_vmem_limit(L, TN, x.dtype.itemsize, fused=False)),
    )(xp, w_t, b_t, g_t)
    return _unpack(out_p, B, L, V)


def gcm_forward_with_errors(x, gt, weight_iov, bias_lv, gating_v, batch_block=None):
    """Fused output calibration + per-sample MSE/MAE vs. ground truth."""
    B, L, V = x.shape
    tb = _pick_batch_block(B, L, V, x.dtype.itemsize, batch_block)
    nb = pl.cdiv(B, tb)
    TN = tb * V
    xp, gtp = _pack(x), _pack(gt)
    w_t, b_t, g_t = _tile_params(weight_iov, bias_lv, gating_v, tb)
    out_p, sq, ab = pl.pallas_call(
        _gcm_err_kernel,
        out_shape=(jax.ShapeDtypeStruct((L, B * V), x.dtype),
                   jax.ShapeDtypeStruct((1, B * V), jnp.float32),
                   jax.ShapeDtypeStruct((1, B * V), jnp.float32)),
        grid=(nb,),
        in_specs=[
            pl.BlockSpec((L, TN), lambda b: (0, b)),        # x
            pl.BlockSpec((L, L, TN), lambda b: (0, 0, 0)),  # weight
            pl.BlockSpec((L, TN), lambda b: (0, 0)),        # bias
            pl.BlockSpec((1, TN), lambda b: (0, 0)),        # tanh(gating)
            pl.BlockSpec((L, TN), lambda b: (0, b)),        # ground truth
        ],
        out_specs=(pl.BlockSpec((L, TN), lambda b: (0, b)),
                   pl.BlockSpec((1, TN), lambda b: (0, b)),
                   pl.BlockSpec((1, TN), lambda b: (0, b))),
        compiler_params=pltpu.CompilerParams(
            dimension_semantics=("parallel",),
            vmem_limit_bytes=_gcm_vmem_limit(L, TN, x.dtype.itemsize, fused=True)),
    )(xp, w_t, b_t, g_t, gtp)
    out = _unpack(out_p, B, L, V)
    # Tiny epilogue fold over the V lanes of each sample (B*V scalars) in the wrapper.
    inv = 1.0 / float(L * V)
    mse = jnp.sum(sq.reshape(B, V), axis=1) * inv
    mae = jnp.sum(ab.reshape(B, V), axis=1) * inv
    return out, mse, mae


def per_sample_mse_mae(pred, gt, batch_block=None):
    """Matches F.mse_loss / F.l1_loss(reduction='none').mean(dim=(-2, -1)).

    Inputs are viewed as (B, P*V) (a free reshape) so the lane axis is P*V-dense.
    """
    B, P, V = pred.shape
    pv = P * V
    p2 = pred.reshape(B, pv)
    g2 = gt.reshape(B, pv)
    tb = _pick_rows(B, pv, pred.dtype.itemsize, batch_block)
    nb = pl.cdiv(B, tb)
    mse, mae = pl.pallas_call(
        _err_kernel,
        out_shape=(jax.ShapeDtypeStruct((B, 1), jnp.float32),
                   jax.ShapeDtypeStruct((B, 1), jnp.float32)),
        grid=(nb,),
        in_specs=[pl.BlockSpec((tb, pv), lambda b: (b, 0)),
                  pl.BlockSpec((tb, pv), lambda b: (b, 0))],
        out_specs=(pl.BlockSpec((tb, 1), lambda b: (b, 0)),
                   pl.BlockSpec((tb, 1), lambda b: (b, 0))),
        compiler_params=pltpu.CompilerParams(
            dimension_semantics=("parallel",),
            vmem_limit_bytes=_err_vmem_limit(tb, pv, pred.dtype.itemsize)),
    )(p2, g2)
    return mse[:, 0], mae[:, 0]


# ---------------------------------------------------------------------------
# Adapter-like wrapper holding the Calibration (in_cali / out_cali GCM) parameters.
# ---------------------------------------------------------------------------
class AdapterPallas:
    # TODO(synk): the wrapped forecasting model, optimizer/adaptation loop, dataloader
    # and FFT-based PAAS period estimation have no Pallas equivalent; only the
    # adapter's own tensor math (GCM calibration + error metrics) is implemented.

    def __init__(self, seq_len, pred_len, n_var, gating_init=0.01, key=None):
        key = jax.random.PRNGKey(0) if key is None else key
        k1, k2, k3, k4 = jax.random.split(key, 4)
        # NOTE: the PyTorch GCM zero-inits weight/bias; small random values are used so
        # the contraction path is actually exercised by the self-test below.
        self.in_cali = dict(
            weight=0.05 * jax.random.normal(k1, (seq_len, seq_len, n_var), jnp.float32),
            bias=0.05 * jax.random.normal(k2, (seq_len, n_var), jnp.float32),
            gating=gating_init * jnp.ones((n_var,), jnp.float32),
        )
        self.out_cali = dict(
            weight=0.05 * jax.random.normal(k3, (pred_len, pred_len, n_var), jnp.float32),
            bias=0.05 * jax.random.normal(k4, (pred_len, n_var), jnp.float32),
            gating=gating_init * jnp.ones((n_var,), jnp.float32),
        )

    def input_calibration(self, enc_window, batch_block=None):      # (B, seq_len, n_var)
        p = self.in_cali
        return gcm_forward(enc_window, p["weight"], p["bias"], p["gating"], batch_block)

    def output_calibration(self, pred, batch_block=None):           # (B, pred_len, n_var)
        p = self.out_cali
        return gcm_forward(pred, p["weight"], p["bias"], p["gating"], batch_block)

    def output_calibration_with_errors(self, pred, gt, batch_block=None):
        p = self.out_cali
        return gcm_forward_with_errors(pred, gt, p["weight"], p["bias"], p["gating"],
                                       batch_block)


# ---------------------------------------------------------------------------
# Pure-JAX reference (mirrors the PyTorch einsum exactly) for verification.
# ---------------------------------------------------------------------------
def gcm_reference(x, weight_iov, bias_lv, gating_v):
    return x + jnp.tanh(gating_v) * (
        jnp.einsum('biv,iov->bov', x, weight_iov) + bias_lv)


if __name__ == "__main__":
    B, SEQ_LEN, PRED_LEN, N_VAR = 2, 16, 8, 4

    key = jax.random.PRNGKey(0)
    kx, kp, kg, kparam, kx2, kg2 = jax.random.split(key, 6)
    enc_window = jax.random.normal(kx, (B, SEQ_LEN, N_VAR), jnp.float32)
    pred = jax.random.normal(kp, (B, PRED_LEN, N_VAR), jnp.float32)
    gt = jax.random.normal(kg, (B, PRED_LEN, N_VAR), jnp.float32)

    adapter = AdapterPallas(SEQ_LEN, PRED_LEN, N_VAR, gating_init=0.01, key=kparam)

    # --- input calibration (GCM over seq_len), single small block ---
    enc_cal = adapter.input_calibration(enc_window)
    enc_ref = gcm_reference(enc_window, adapter.in_cali["weight"],
                            adapter.in_cali["bias"], adapter.in_cali["gating"])

    # --- output calibration fused with per-sample error metrics ---
    pred_cal, mse_f, mae_f = adapter.output_calibration_with_errors(pred, gt)
    pred_ref = gcm_reference(pred, adapter.out_cali["weight"],
                             adapter.out_cali["bias"], adapter.out_cali["gating"])
    d = pred_ref - gt
    mse_ref = jnp.mean(d * d, axis=(-2, -1))
    mae_ref = jnp.mean(jnp.abs(d), axis=(-2, -1))

    # --- standalone per-sample error kernel ---
    mse_s, mae_s = per_sample_mse_mae(pred_cal, gt)

    # --- larger batch: multi-block pipelined grid with a ragged last batch block ---
    B2 = 80
    pred2 = jax.random.normal(kx2, (B2, PRED_LEN, N_VAR), jnp.float32)
    gt2 = jax.random.normal(kg2, (B2, PRED_LEN, N_VAR), jnp.float32)
    out2, mse2, mae2 = adapter.output_calibration_with_errors(pred2, gt2)
    out2_ref = gcm_reference(pred2, adapter.out_cali["weight"],
                             adapter.out_cali["bias"], adapter.out_cali["gating"])
    d2 = out2_ref - gt2
    mse2_ref = jnp.mean(d2 * d2, axis=(-2, -1))
    mae2_ref = jnp.mean(jnp.abs(d2), axis=(-2, -1))
    mse2_s, mae2_s = per_sample_mse_mae(out2, gt2)

    jax.block_until_ready((enc_cal, pred_cal, mse_f, mae_f, mse_s, mae_s,
                           out2, mse2, mae2, mse2_s, mae2_s))

    assert jnp.allclose(enc_cal, enc_ref, atol=1e-5, rtol=1e-5)
    assert jnp.allclose(pred_cal, pred_ref, atol=1e-5, rtol=1e-5)
    assert jnp.allclose(mse_f, mse_ref, atol=1e-5, rtol=1e-5)
    assert jnp.allclose(mae_f, mae_ref, atol=1e-5, rtol=1e-5)
    assert jnp.allclose(mse_s, mse_ref, atol=1e-5, rtol=1e-5)
    assert jnp.allclose(mae_s, mae_ref, atol=1e-5, rtol=1e-5)
    # ragged / multi-block case
    assert jnp.allclose(out2, out2_ref, atol=1e-5, rtol=1e-5)
    assert jnp.allclose(mse2, mse2_ref, atol=1e-5, rtol=1e-5)
    assert jnp.allclose(mae2, mae2_ref, atol=1e-5, rtol=1e-5)
    assert jnp.allclose(mse2_s, mse2_ref, atol=1e-5, rtol=1e-5)
    assert jnp.allclose(mae2_s, mae2_ref, atol=1e-5, rtol=1e-5)

    print("KERNEL_OK")
</pallas_src>

<mosaic_0001>
module attributes {stable_mosaic.version = 11 : i64} {
  func.func @_gcm_kernel(%arg0: i32, %arg1: memref<16x8xf32, #tpu.memory_space<vmem>>, %arg2: memref<16x16x8xf32, #tpu.memory_space<vmem>>, %arg3: memref<16x8xf32, #tpu.memory_space<vmem>>, %arg4: memref<1x8xf32, #tpu.memory_space<vmem>>, %arg5: memref<16x8xf32, #tpu.memory_space<vmem>>) attributes {dimension_semantics = [#tpu.dimension_semantics<parallel>], iteration_bounds = array<i64: 1>, scalar_prefetch = 0 : i64, scratch_operands = 0 : i64, tpu.core_type = #tpu.core_type<tc>, window_params = [{transform_indices = @transform_0, window_bounds = array<i64: 16, 8>}, {pipeline_mode = #tpu.pipeline_mode<synchronous>, transform_indices = @transform_1, window_bounds = array<i64: 16, 16, 8>}, {pipeline_mode = #tpu.pipeline_mode<synchronous>, transform_indices = @transform_2, window_bounds = array<i64: 16, 8>}, {pipeline_mode = #tpu.pipeline_mode<synchronous>, transform_indices = @transform_3, window_bounds = array<i64: 1, 8>}, {transform_indices = @transform_4, window_bounds = array<i64: 16, 8>}]} {
    %cst = arith.constant 0.000000e+00 : f32
    %0 = vector.broadcast %cst : f32 to vector<16x8xf32>
    %c0 = arith.constant 0 : index
    %c0_0 = arith.constant 0 : index
    %1 = vector.load %arg1[%c0, %c0_0] : memref<16x8xf32, #tpu.memory_space<vmem>>, vector<1x8xf32>
    %2 = vector.shape_cast %1 : vector<1x8xf32> to vector<8xf32>
    %c0_1 = arith.constant 0 : index
    %c0_2 = arith.constant 0 : index
    %c0_3 = arith.constant 0 : index
    %3 = vector.load %arg2[%c0_1, %c0_2, %c0_3] : memref<16x16x8xf32, #tpu.memory_space<vmem>>, vector<1x16x8xf32>
    %4 = vector.shape_cast %3 : vector<1x16x8xf32> to vector<16x8xf32>
    %5 = vector.shape_cast %2 : vector<8xf32> to vector<1x8xf32>
    %6 = vector.broadcast %5 : vector<1x8xf32> to vector<16x8xf32>
    %7 = arith.mulf %6, %4 : vector<16x8xf32>
    %8 = arith.addf %0, %7 : vector<16x8xf32>
    %c1 = arith.constant 1 : index
    %c0_4 = arith.constant 0 : index
    %9 = vector.load %arg1[%c1, %c0_4] : memref<16x8xf32, #tpu.memory_space<vmem>>, vector<1x8xf32>
    %10 = vector.shape_cast %9 : vector<1x8xf32> to vector<8xf32>
    %c1_5 = arith.constant 1 : index
    %c0_6 = arith.constant 0 : index
    %c0_7 = arith.constant 0 : index
    %11 = vector.load %arg2[%c1_5, %c0_6, %c0_7] : memref<16x16x8xf32, #tpu.memory_space<vmem>>, vector<1x16x8xf32>
    %12 = vector.shape_cast %11 : vector<1x16x8xf32> to vector<16x8xf32>
    %13 = vector.shape_cast %10 : vector<8xf32> to vector<1x8xf32>
    %14 = vector.broadcast %13 : vector<1x8xf32> to vector<16x8xf32>
    %15 = arith.mulf %14, %12 : vector<16x8xf32>
    %16 = arith.addf %8, %15 : vector<16x8xf32>
    %c2 = arith.constant 2 : index
    %c0_8 = arith.constant 0 : index
    %17 = vector.load %arg1[%c2, %c0_8] : memref<16x8xf32, #tpu.memory_space<vmem>>, vector<1x8xf32>
    %18 = vector.shape_cast %17 : vector<1x8xf32> to vector<8xf32>
    %c2_9 = arith.constant 2 : index
    %c0_10 = arith.constant 0 : index
    %c0_11 = arith.constant 0 : index
    %19 = vector.load %arg2[%c2_9, %c0_10, %c0_11] : memref<16x16x8xf32, #tpu.memory_space<vmem>>, vector<1x16x8xf32>
    %20 = vector.shape_cast %19 : vector<1x16x8xf32> to vector<16x8xf32>
    %21 = vector.shape_cast %18 : vector<8xf32> to vector<1x8xf32>
    %22 = vector.broadcast %21 : vector<1x8xf32> to vector<16x8xf32>
    %23 = arith.mulf %22, %20 : vector<16x8xf32>
    %24 = arith.addf %16, %23 : vector<16x8xf32>
    %c3 = arith.constant 3 : index
    %c0_12 = arith.constant 0 : index
    %25 = vector.load %arg1[%c3, %c0_12] : memref<16x8xf32, #tpu.memory_space<vmem>>, vector<1x8xf32>
    %26 = vector.shape_cast %25 : vector<1x8xf32> to vector<8xf32>
    %c3_13 = arith.constant 3 : index
    %c0_14 = arith.constant 0 : index
    %c0_15 = arith.constant 0 : index
    %27 = vector.load %arg2[%c3_13, %c0_14, %c0_15] : memref<16x16x8xf32, #tpu.memory_space<vmem>>, vector<1x16x8xf32>
    %28 = vector.shape_cast %27 : vector<1x16x8xf32> to vector<16x8xf32>
    %29 = vector.shape_cast %26 : vector<8xf32> to vector<1x8xf32>
    %30 = vector.broadcast %29 : vector<1x8xf32> to vector<16x8xf32>
    %31 = arith.mulf %30, %28 : vector<16x8xf32>
    %32 = arith.addf %24, %31 : vector<16x8xf32>
    %c4 = arith.constant 4 : index
    %c0_16 = arith.constant 0 : index
    %33 = vector.load %arg1[%c4, %c0_16] : memref<16x8xf32, #tpu.memory_space<vmem>>, vector<1x8xf32>
    %34 = vector.shape_cast %33 : vector<1x8xf32> to vector<8xf32>
    %c4_17 = arith.constant 4 : index
    %c0_18 = arith.constant 0 : index
    %c0_19 = arith.constant 0 : index
    %35 = vector.load %arg2[%c4_17, %c0_18, %c0_19] : memref<16x16x8xf32, #tpu.memory_space<vmem>>, vector<1x16x8xf32>
    %36 = vector.shape_cast %35 : vector<1x16x8xf32> to vector<16x8xf32>
    %37 = vector.shape_cast %34 : vector<8xf32> to vector<1x8xf32>
    %38 = vector.broadcast %37 : vector<1x8xf32> to vector<16x8xf32>
    %39 = arith.mulf %38, %36 : vector<16x8xf32>
    %40 = arith.addf %32, %39 : vector<16x8xf32>
    %c5 = arith.constant 5 : index
    %c0_20 = arith.constant 0 : index
    %41 = vector.load %arg1[%c5, %c0_20] : memref<16x8xf32, #tpu.memory_space<vmem>>, vector<1x8xf32>
    %42 = vector.shape_cast %41 : vector<1x8xf32> to vector<8xf32>
    %c5_21 = arith.constant 5 : index
    %c0_22 = arith.constant 0 : index
    %c0_23 = arith.constant 0 : index
    %43 = vector.load %arg2[%c5_21, %c0_22, %c0_23] : memref<16x16x8xf32, #tpu.memory_space<vmem>>, vector<1x16x8xf32>
    %44 = vector.shape_cast %43 : vector<1x16x8xf32> to vector<16x8xf32>
    %45 = vector.shape_cast %42 : vector<8xf32> to vector<1x8xf32>
    %46 = vector.broadcast %45 : vector<1x8xf32> to vector<16x8xf32>
    %47 = arith.mulf %46, %44 : vector<16x8xf32>
    %48 = arith.addf %40, %47 : vector<16x8xf32>
    %c6 = arith.constant 6 : index
    %c0_24 = arith.constant 0 : index
    %49 = vector.load %arg1[%c6, %c0_24] : memref<16x8xf32, #tpu.memory_space<vmem>>, vector<1x8xf32>
    %50 = vector.shape_cast %49 : vector<1x8xf32> to vector<8xf32>
    %c6_25 = arith.constant 6 : index
    %c0_26 = arith.constant 0 : index
    %c0_27 = arith.constant 0 : index
    %51 = vector.load %arg2[%c6_25, %c0_26, %c0_27] : memref<16x16x8xf32, #tpu.memory_space<vmem>>, vector<1x16x8xf32>
    %52 = vector.shape_cast %51 : vector<1x16x8xf32> to vector<16x8xf32>
    %53 = vector.shape_cast %50 : vector<8xf32> to vector<1x8xf32>
    %54 = vector.broadcast %53 : vector<1x8xf32> to vector<16x8xf32>
    %55 = arith.mulf %54, %52 : vector<16x8xf32>
    %56 = arith.addf %48, %55 : vector<16x8xf32>
    %c7 = arith.constant 7 : index
    %c0_28 = arith.constant 0 : index
    %57 = vector.load %arg1[%c7, %c0_28] : memref<16x8xf32, #tpu.memory_space<vmem>>, vector<1x8xf32>
    %58 = vector.shape_cast %57 : vector<1x8xf32> to vector<8xf32>
    %c7_29 = arith.constant 7 : index
    %c0_30 = arith.constant 0 : index
    %c0_31 = arith.constant 0 : index
    %59 = vector.load %arg2[%c7_29, %c0_30, %c0_31] : memref<16x16x8xf32, #tpu.memory_space<vmem>>, vector<1x16x8xf32>
    %60 = vector.shape_cast %59 : vector<1x16x8xf32> to vector<16x8xf32>
    %61 = vector.shape_cast %58 : vector<8xf32> to vector<1x8xf32>
    %62 = vector.broadcast %61 : vector<1x8xf32> to vector<16x8xf32>
    %63 = arith.mulf %62, %60 : vector<16x8xf32>
    %64 = arith.addf %56, %63 : vector<16x8xf32>
    %c8 = arith.constant 8 : index
    %c0_32 = arith.constant 0 : index
    %65 = vector.load %arg1[%c8, %c0_32] : memref<16x8xf32, #tpu.memory_space<vmem>>, vector<1x8xf32>
    %66 = vector.shape_cast %65 : vector<1x8xf32> to vector<8xf32>
    %c8_33 = arith.constant 8 : index
    %c0_34 = arith.constant 0 : index
    %c0_35 = arith.constant 0 : index
    %67 = vector.load %arg2[%c8_33, %c0_34, %c0_35] : memref<16x16x8xf32, #tpu.memory_space<vmem>>, vector<1x16x8xf32>
    %68 = vector.shape_cast %67 : vector<1x16x8xf32> to vector<16x8xf32>
    %69 = vector.shape_cast %66 : vector<8xf32> to vector<1x8xf32>
    %70 = vector.broadcast %69 : vector<1x8xf32> to vector<16x8xf32>
    %71 = arith.mulf %70, %68 : vector<16x8xf32>
    %72 = arith.addf %64, %71 : vector<16x8xf32>
    %c9 = arith.constant 9 : index
    %c0_36 = arith.constant 0 : index
    %73 = vector.load %arg1[%c9, %c0_36] : memref<16x8xf32, #tpu.memory_space<vmem>>, vector<1x8xf32>
    %74 = vector.shape_cast %73 : vector<1x8xf32> to vector<8xf32>
    %c9_37 = arith.constant 9 : index
    %c0_38 = arith.constant 0 : index
    %c0_39 = arith.constant 0 : index
    %75 = vector.load %arg2[%c9_37, %c0_38, %c0_39] : memref<16x16x8xf32, #tpu.memory_space<vmem>>, vector<1x16x8xf32>
    %76 = vector.shape_cast %75 : vector<1x16x8xf32> to vector<16x8xf32>
    %77 = vector.shape_cast %74 : vector<8xf32> to vector<1x8xf32>
    %78 = vector.broadcast %77 : vector<1x8xf32> to vector<16x8xf32>
    %79 = arith.mulf %78, %76 : vector<16x8xf32>
    %80 = arith.addf %72, %79 : vector<16x8xf32>
    %c10 = arith.constant 10 : index
    %c0_40 = arith.constant 0 : index
    %81 = vector.load %arg1[%c10, %c0_40] : memref<16x8xf32, #tpu.memory_space<vmem>>, vector<1x8xf32>
    %82 = vector.shape_cast %81 : vector<1x8xf32> to vector<8xf32>
    %c10_41 = arith.constant 10 : index
    %c0_42 = arith.constant 0 : index
    %c0_43 = arith.constant 0 : index
    %83 = vector.load %arg2[%c10_41, %c0_42, %c0_43] : memref<16x16x8xf32, #tpu.memory_space<vmem>>, vector<1x16x8xf32>
    %84 = vector.shape_cast %83 : vector<1x16x8xf32> to vector<16x8xf32>
    %85 = vector.shape_cast %82 : vector<8xf32> to vector<1x8xf32>
    %86 = vector.broadcast %85 : vector<1x8xf32> to vector<16x8xf32>
    %87 = arith.mulf %86, %84 : vector<16x8xf32>
    %88 = arith.addf %80, %87 : vector<16x8xf32>
    %c11 = arith.constant 11 : index
    %c0_44 = arith.constant 0 : index
    %89 = vector.load %arg1[%c11, %c0_44] : memref<16x8xf32, #tpu.memory_space<vmem>>, vector<1x8xf32>
    %90 = vector.shape_cast %89 : vector<1x8xf32> to vector<8xf32>
    %c11_45 = arith.constant 11 : index
    %c0_46 = arith.constant 0 : index
    %c0_47 = arith.constant 0 : index
    %91 = vector.load %arg2[%c11_45, %c0_46, %c0_47] : memref<16x16x8xf32, #tpu.memory_space<vmem>>, vector<1x16x8xf32>
    %92 = vector.shape_cast %91 : vector<1x16x8xf32> to vector<16x8xf32>
    %93 = vector.shape_cast %90 : vector<8xf32> to vector<1x8xf32>
    %94 = vector.broadcast %93 : vector<1x8xf32> to vector<16x8xf32>
    %95 = arith.mulf %94, %92 : vector<16x8xf32>
    %96 = arith.addf %88, %95 : vector<16x8xf32>
    %c12 = arith.constant 12 : index
    %c0_48 = arith.constant 0 : index
    %97 = vector.load %arg1[%c12, %c0_48] : memref<16x8xf32, #tpu.memory_space<vmem>>, vector<1x8xf32>
    %98 = vector.shape_cast %97 : vector<1x8xf32> to vector<8xf32>
    %c12_49 = arith.constant 12 : index
    %c0_50 = arith.constant 0 : index
    %c0_51 = arith.constant 0 : index
    %99 = vector.load %arg2[%c12_49, %c0_50, %c0_51] : memref<16x16x8xf32, #tpu.memory_space<vmem>>, vector<1x16x8xf32>
    %100 = vector.shape_cast %99 : vector<1x16x8xf32> to vector<16x8xf32>
    %101 = vector.shape_cast %98 : vector<8xf32> to vector<1x8xf32>
    %102 = vector.broadcast %101 : vector<1x8xf32> to vector<16x8xf32>
    %103 = arith.mulf %102, %100 : vector<16x8xf32>
    %104 = arith.addf %96, %103 : vector<16x8xf32>
    %c13 = arith.constant 13 : index
    %c0_52 = arith.constant 0 : index
    %105 = vector.load %arg1[%c13, %c0_52] : memref<16x8xf32, #tpu.memory_space<vmem>>, vector<1x8xf32>
    %106 = vector.shape_cast %105 : vector<1x8xf32> to vector<8xf32>
    %c13_53 = arith.constant 13 : index
    %c0_54 = arith.constant 0 : index
    %c0_55 = arith.constant 0 : index
    %107 = vector.load %arg2[%c13_53, %c0_54, %c0_55] : memref<16x16x8xf32, #tpu.memory_space<vmem>>, vector<1x16x8xf32>
    %108 = vector.shape_cast %107 : vector<1x16x8xf32> to vector<16x8xf32>
    %109 = vector.shape_cast %106 : vector<8xf32> to vector<1x8xf32>
    %110 = vector.broadcast %109 : vector<1x8xf32> to vector<16x8xf32>
    %111 = arith.mulf %110, %108 : vector<16x8xf32>
    %112 = arith.addf %104, %111 : vector<16x8xf32>
    %c14 = arith.constant 14 : index
    %c0_56 = arith.constant 0 : index
    %113 = vector.load %arg1[%c14, %c0_56] : memref<16x8xf32, #tpu.memory_space<vmem>>, vector<1x8xf32>
    %114 = vector.shape_cast %113 : vector<1x8xf32> to vector<8xf32>
    %c14_57 = arith.constant 14 : index
    %c0_58 = arith.constant 0 : index
    %c0_59 = arith.constant 0 : index
    %115 = vector.load %arg2[%c14_57, %c0_58, %c0_59] : memref<16x16x8xf32, #tpu.memory_space<vmem>>, vector<1x16x8xf32>
    %116 = vector.shape_cast %115 : vector<1x16x8xf32> to vector<16x8xf32>
    %117 = vector.shape_cast %114 : vector<8xf32> to vector<1x8xf32>
    %118 = vector.broadcast %117 : vector<1x8xf32> to vector<16x8xf32>
    %119 = arith.mulf %118, %116 : vector<16x8xf32>
    %120 = arith.addf %112, %119 : vector<16x8xf32>
    %c15 = arith.constant 15 : index
    %c0_60 = arith.constant 0 : index
    %121 = vector.load %arg1[%c15, %c0_60] : memref<16x8xf32, #tpu.memory_space<vmem>>, vector<1x8xf32>
    %122 = vector.shape_cast %121 : vector<1x8xf32> to vector<8xf32>
    %c15_61 = arith.constant 15 : index
    %c0_62 = arith.constant 0 : index
    %c0_63 = arith.constant 0 : index
    %123 = vector.load %arg2[%c15_61, %c0_62, %c0_63] : memref<16x16x8xf32, #tpu.memory_space<vmem>>, vector<1x16x8xf32>
    %124 = vector.shape_cast %123 : vector<1x16x8xf32> to vector<16x8xf32>
    %125 = vector.shape_cast %122 : vector<8xf32> to vector<1x8xf32>
    %126 = vector.broadcast %125 : vector<1x8xf32> to vector<16x8xf32>
    %127 = arith.mulf %126, %124 : vector<16x8xf32>
    %128 = arith.addf %120, %127 : vector<16x8xf32>
    %c0_64 = arith.constant 0 : index
    %c0_65 = arith.constant 0 : index
    %129 = vector.load %arg1[%c0_64, %c0_65] : memref<16x8xf32, #tpu.memory_space<vmem>>, vector<16x8xf32>
    %c0_66 = arith.constant 0 : index
    %c0_67 = arith.constant 0 : index
    %130 = vector.load %arg4[%c0_66, %c0_67] : memref<1x8xf32, #tpu.memory_space<vmem>>, vector<1x8xf32>
    %c0_68 = arith.constant 0 : index
    %c0_69 = arith.constant 0 : index
    %131 = vector.load %arg3[%c0_68, %c0_69] : memref<16x8xf32, #tpu.memory_space<vmem>>, vector<16x8xf32>
    %132 = arith.addf %128, %131 : vector<16x8xf32>
    %133 = vector.broadcast %130 : vector<1x8xf32> to vector<16x8xf32>
    %134 = arith.mulf %133, %132 : vector<16x8xf32>
    %135 = arith.addf %129, %134 : vector<16x8xf32>
    %c0_70 = arith.constant 0 : index
    %c0_71 = arith.constant 0 : index
    %136 = vector.load %arg5[%c0_70, %c0_71] : memref<16x8xf32, #tpu.memory_space<vmem>>, vector<16x8xf32>
    tpu.vector_store %arg5[%c0_70, %c0_71], %135 {strides = array<i32>} : memref<16x8xf32, #tpu.memory_space<vmem>>, vector<16x8xf32>,
    return
  }
  func.func @transform_0(%arg0: i32) -> (i32, i32) {
    %c0_i32 = arith.constant 0 : i32
    %c0_i32_0 = arith.constant 0 : i32
    return %c0_i32, %arg0 : i32, i32
  }
  func.func @transform_1(%arg0: i32) -> (i32, i32, i32) {
    %c0_i32 = arith.constant 0 : i32
    %c0_i32_0 = arith.constant 0 : i32
    %c0_i32_1 = arith.constant 0 : i32
    %c0_i32_2 = arith.constant 0 : i32
    return %c0_i32, %c0_i32_0, %c0_i32_1 : i32, i32, i32
  }
  func.func @transform_2(%arg0: i32) -> (i32, i32) {
    %c0_i32 = arith.constant 0 : i32
    %c0_i32_0 = arith.constant 0 : i32
    %c0_i32_1 = arith.constant 0 : i32
    return %c0_i32, %c0_i32_0 : i32, i32
  }
  func.func @transform_3(%arg0: i32) -> (i32, i32) {
    %c0_i32 = arith.constant 0 : i32
    %c0_i32_0 = arith.constant 0 : i32
    %c0_i32_1 = arith.constant 0 : i32
    return %c0_i32, %c0_i32_0 : i32, i32
  }
  func.func @transform_4(%arg0: i32) -> (i32, i32) {
    %c0_i32 = arith.constant 0 : i32
    %c0_i32_0 = arith.constant 0 : i32
    return %c0_i32, %arg0 : i32, i32
  }
}

</mosaic_0001>

<bundles_post_ra>
// kernel: tpu_custom_call.1
= control target key start
LH: loop header
LB: loop body
LE: loop exit
PB: predicated region body
PF: predicated region fallthrough
CT: control target
= control target key end

     0   :  { %vm225_vm0 = vcmask 64512   ;;  %s469_s0 = inlined_call_operand.vmem [shape: f32[16,8], index: 0, kind: input, shape index: {}]   ;;  %s470_s1 = inlined_call_operand.vmem [shape: f32[16,16,8], index: 1, kind: input, shape index: {}]   ;;  %s471_s2 = inlined_call_operand.vmem [shape: f32[16,8], index: 2, kind: input, shape index: {}]   ;;  %s472_s3 = inlined_call_operand.vmem [shape: f32[1,8], index: 3, kind: input, shape index: {}]   ;;  %s473_s4 = inlined_call_operand.vmem [shape: f32[16,8], index: 4, kind: output, shape index: {}]  }
   0x1   :  { %v232_v0 = vld [vmem:[%s469_s0] ss:$0 sm:$0xff]  ;;  %v19_v2 = vld [vmem:[%s470_s1 + $0x8] sm:$0xff]  ;;  %v235_v5 = vld [vmem:[%s469_s0 + $0x1] ss:$0 sm:$0xff] }
   0x2   :  { %v18_v1 = vld [vmem:[%s470_s1] sm:$0xff]  ;;  %v25_v4 = vmul.f32 %v232_v0, %v19_v2  ;;  %v233_v6 = vld [vmem:[%s470_s1 + $0x10] sm:$0xff]  ;;  %v234_v7 = vld [vmem:[%s470_s1 + $0x18] sm:$0xff] }
   0x3   :  { %v24_v3 = vmul.f32 %v232_v0, %v18_v1  ;;  %v36_v8 = vmul.f32 %v235_v5, %v233_v6  ;;  %v37_v9 = vmul.f32 %v235_v5, %v234_v7  ;;  %v238_v10 = vld [vmem:[%s469_s0 + $0x2] ss:$0 sm:$0xff]  ;;  %v237_v12 = vld [vmem:[%s470_s1 + $0x28] sm:$0xff]  ;;  %v241_v15 = vld [vmem:[%s469_s0 + $0x3] ss:$0 sm:$0xff] }
   0x4   :  { %v236_v11 = vld [vmem:[%s470_s1 + $0x20] sm:$0xff]  ;;  %v49_v14 = vmul.f32 %v238_v10, %v237_v12  ;;  %v239_v16 = vld [vmem:[%s470_s1 + $0x30] sm:$0xff]  ;;  %v240_v17 = vld [vmem:[%s470_s1 + $0x38] sm:$0xff] }
   0x5   :  { %v48_v13 = vmul.f32 %v238_v10, %v236_v11  ;;  %v38_v18 = vadd.f32 %v36_v8, %v24_v3  ;;  %v39_v19 = vadd.f32 %v37_v9, %v25_v4  ;;  %v60_v20 = vmul.f32 %v241_v15, %v239_v16  ;;  %v244_v22 = vld [vmem:[%s469_s0 + $0x4] ss:$0 sm:$0xff]  ;;  %v243_v24 = vld [vmem:[%s470_s1 + $0x48] sm:$0xff]  ;;  %v247_v25 = vld [vmem:[%s469_s0 + $0x5] ss:$0 sm:$0xff] }
   0x6   :  { %v61_v21 = vmul.f32 %v241_v15, %v240_v17  ;;  %v242_v23 = vld [vmem:[%s470_s1 + $0x40] sm:$0xff]  ;;  %v245_v26 = vld [vmem:[%s470_s1 + $0x50] sm:$0xff]  ;;  %v246_v27 = vld [vmem:[%s470_s1 + $0x58] sm:$0xff]  ;;  %v73_v31 = vmul.f32 %v244_v22, %v243_v24 }
   0x7   :  { %v50_v28 = vadd.f32 %v48_v13, %v38_v18  ;;  %v51_v29 = vadd.f32 %v49_v14, %v39_v19  ;;  %v72_v30 = vmul.f32 %v244_v22, %v242_v23  ;;  %v250_v32 = vld [vmem:[%s469_s0 + $0x6] ss:$0 sm:$0xff]  ;;  %v249_v34 = vld [vmem:[%s470_s1 + $0x68] sm:$0xff]  ;;  %v84_v37 = vmul.f32 %v247_v25, %v245_v26  ;;  %v253_v39 = vld [vmem:[%s469_s0 + $0x7] ss:$0 sm:$0xff] }
   0x8   :  { %v248_v33 = vld [vmem:[%s470_s1 + $0x60] sm:$0xff]  ;;  %v85_v38 = vmul.f32 %v247_v25, %v246_v27  ;;  %v251_v40 = vld [vmem:[%s470_s1 + $0x70] sm:$0xff]  ;;  %v252_v41 = vld [vmem:[%s470_s1 + $0x78] sm:$0xff]  ;;  %v97_v45 = vmul.f32 %v250_v32, %v249_v34 }
   0x9   :  { %v62_v35 = vadd.f32 %v60_v20, %v50_v28  ;;  %v63_v36 = vadd.f32 %v61_v21, %v51_v29  ;;  %v96_v44 = vmul.f32 %v250_v32, %v248_v33  ;;  %v256_v46 = vld [vmem:[%s469_s0 + $0x8] ss:$0 sm:$0xff]  ;;  %v254_v47 = vld [vmem:[%s470_s1 + $0x80] sm:$0xff]  ;;  %v108_v51 = vmul.f32 %v253_v39, %v251_v40  ;;  %v259_v53 = vld [vmem:[%s469_s0 + $0x9] ss:$0 sm:$0xff] }
   0xa   :  { %v255_v48 = vld [vmem:[%s470_s1 + $0x88] sm:$0xff]  ;;  %v109_v52 = vmul.f32 %v253_v39, %v252_v41  ;;  %v257_v54 = vld [vmem:[%s470_s1 + $0x90] sm:$0xff]  ;;  %v258_v55 = vld [vmem:[%s470_s1 + $0x98] sm:$0xff]  ;;  %v120_v58 = vmul.f32 %v256_v46, %v254_v47 }
   0xb   :  { %v74_v42 = vadd.f32 %v72_v30, %v62_v35  ;;  %v75_v43 = vadd.f32 %v73_v31, %v63_v36  ;;  %v121_v59 = vmul.f32 %v256_v46, %v255_v48  ;;  %v262_v60 = vld [vmem:[%s469_s0 + $0xa] ss:$0 sm:$0xff]  ;;  %v260_v61 = vld [vmem:[%s470_s1 + $0xa0] sm:$0xff]  ;;  %v132_v1 = vmul.f32 %v259_v53, %v257_v54  ;;  %v265_v3 = vld [vmem:[%s469_s0 + $0xb] ss:$0 sm:$0xff] }
   0xc   :  { %v261_v62 = vld [vmem:[%s470_s1 + $0xa8] sm:$0xff]  ;;  %v133_v2 = vmul.f32 %v259_v53, %v258_v55  ;;  %v263_v4 = vld [vmem:[%s470_s1 + $0xb0] sm:$0xff]  ;;  %v264_v5 = vld [vmem:[%s470_s1 + $0xb8] sm:$0xff]  ;;  %v144_v8 = vmul.f32 %v262_v60, %v260_v61 }
   0xd   :  { %v86_v49 = vadd.f32 %v84_v37, %v74_v42  ;;  %v87_v50 = vadd.f32 %v85_v38, %v75_v43  ;;  %v145_v9 = vmul.f32 %v262_v60, %v261_v62  ;;  %v268_v10 = vld [vmem:[%s469_s0 + $0xc] ss:$0 sm:$0xff]  ;;  %v266_v11 = vld [vmem:[%s470_s1 + $0xc0] sm:$0xff]  ;;  %v156_v15 = vmul.f32 %v265_v3, %v263_v4  ;;  %v271_v17 = vld [vmem:[%s469_s0 + $0xd] ss:$0 sm:$0xff] }
   0xe   :  { %v267_v12 = vld [vmem:[%s470_s1 + $0xc8] sm:$0xff]  ;;  %v157_v16 = vmul.f32 %v265_v3, %v264_v5  ;;  %v269_v18 = vld [vmem:[%s470_s1 + $0xd0] sm:$0xff]  ;;  %v270_v19 = vld [vmem:[%s470_s1 + $0xd8] sm:$0xff]  ;;  %v168_v22 = vmul.f32 %v268_v10, %v266_v11 }
   0xf   :  { %v98_v56 = vadd.f32 %v96_v44, %v86_v49  ;;  %v99_v57 = vadd.f32 %v97_v45, %v87_v50  ;;  %v169_v23 = vmul.f32 %v268_v10, %v267_v12  ;;  %v274_v24 = vld [vmem:[%s469_s0 + $0xe] ss:$0 sm:$0xff]  ;;  %v272_v25 = vld [vmem:[%s470_s1 + $0xe0] sm:$0xff]  ;;  %v180_v29 = vmul.f32 %v271_v17, %v269_v18  ;;  %v277_v31 = vld [vmem:[%s469_s0 + $0xf] ss:$0 sm:$0xff] }
  0x10   :  { %v273_v26 = vld [vmem:[%s470_s1 + $0xe8] sm:$0xff]  ;;  %v181_v30 = vmul.f32 %v271_v17, %v270_v19  ;;  %v275_v32 = vld [vmem:[%s470_s1 + $0xf0] sm:$0xff]  ;;  %v276_v33 = vld [vmem:[%s470_s1 + $0xf8] sm:$0xff]  ;;  %v192_v36 = vmul.f32 %v274_v24, %v272_v25 }
  0x11   :  { %v110_v63 = vadd.f32 %v108_v51, %v98_v56  ;;  %v111_v0 = vadd.f32 %v109_v52, %v99_v57  ;;  %v193_v37 = vmul.f32 %v274_v24, %v273_v26  ;;  %v204_v40 = vmul.f32 %v277_v31, %v275_v32  ;;  %v211_v44 = vld [vmem:[%s471_s2] sm:$0xff]  ;;  %v212_v45 = vld [vmem:[%s471_s2 + $0x8] sm:$0xff] }
  0x12   :  { %v205_v41 = vmul.f32 %v277_v31, %v276_v33  ;;  %v278_v48 = vld [vmem:[%s472_s3] ss:$0 sm:$0xff]  ;;  %v209_v52 = vld [vmem:[%s469_s0 + $0x8] sm:$0xff] }
  0x13   :  { %v122_v6 = vadd.f32 %v120_v58, %v110_v63  ;;  %v123_v7 = vadd.f32 %v121_v59, %v111_v0  ;;  %v208_v51 = vld [vmem:[%s469_s0] sm:$0xff] }
  0x15   :  { %v134_v13 = vadd.f32 %v132_v1, %v122_v6  ;;  %v135_v14 = vadd.f32 %v133_v2, %v123_v7 }
  0x17   :  { %v146_v20 = vadd.f32 %v144_v8, %v134_v13  ;;  %v147_v21 = vadd.f32 %v145_v9, %v135_v14 }
  0x19   :  { %v158_v27 = vadd.f32 %v156_v15, %v146_v20  ;;  %v159_v28 = vadd.f32 %v157_v16, %v147_v21 }
  0x1b   :  { %v170_v34 = vadd.f32 %v168_v22, %v158_v27  ;;  %v171_v35 = vadd.f32 %v169_v23, %v159_v28 }
  0x1d   :  { %v182_v38 = vadd.f32 %v180_v29, %v170_v34  ;;  %v183_v39 = vadd.f32 %v181_v30, %v171_v35 }
  0x1f   :  { %v194_v42 = vadd.f32 %v192_v36, %v182_v38  ;;  %v195_v43 = vadd.f32 %v193_v37, %v183_v39 }
  0x21   :  { %v206_v46 = vadd.f32 %v204_v40, %v194_v42  ;;  %v207_v47 = vadd.f32 %v205_v41, %v195_v43 }
  0x23   :  { %v213_v49 = vadd.f32 %v211_v44, %v206_v46  ;;  %v214_v50 = vadd.f32 %v212_v45, %v207_v47 }
  0x25   :  { %v221_v53 = vmul.f32 %v278_v48, %v213_v49  ;;  %v222_v54 = vmul.f32 %v278_v48, %v214_v50 }
  0x27   :  { %v223_v55 = vadd.f32 %v221_v53, %v208_v51  ;;  %v224_v56 = vadd.f32 %v222_v54, %v209_v52 }
  0x29   :  { %226 = vst.msk [vmem:[%s473_s4] sm:$0xff] %vm225_vm0, %v223_v55  ;;  %227 = vst.msk [vmem:[%s473_s4 + $0x8] sm:$0xff] %vm225_vm0, %v224_v56 }

</bundles_post_ra>
